<compile_context>
chip_gen: v6e
topology: v6e:2x2x1
jax: 0.10.0
libtpu: 0.0.40
codegen_flags: <defaults>
</compile_context>

<pallas_src>
import jax
import jax.numpy as jnp
from jax.experimental import pallas as pl
from jax.experimental.pallas import tpu as pltpu


def _cdiv(a, b):
    return -(-a // b)


def _round_up(x, m):
    return _cdiv(x, m) * m


def _tpu_params():
    """Best-effort (vmem_bytes, tensorcores_per_device, device_kind)."""
    kind = ""
    try:
        kind = jax.devices()[0].device_kind.lower()
    except Exception:
        pass
    vmem_bytes = None
    num_cores = None
    try:
        info = pltpu.get_tpu_info()
        v = getattr(info, "vmem_capacity_bytes", None)
        if v:
            vmem_bytes = int(v)
        for name in ("num_tensorcores", "tensorcore_count", "cores_per_chip", "num_cores"):
            nc = getattr(info, name, None)
            if nc:
                num_cores = int(nc)
                break
    except Exception:
        pass
    if vmem_bytes is None:
        # v7x: 64 MiB VMEM per TensorCore; v5e/v6e: 128 MiB.
        vmem_bytes = (64 << 20) if "7" in kind else (128 << 20)
    if num_cores is None:
        # v4/v5p (megacore) and v7x expose 2 TensorCores per JAX device.
        num_cores = 2 if any(s in kind for s in ("v4", "v5p", "7")) else 1
    num_cores = max(1, min(int(num_cores), 2))
    return int(vmem_bytes), num_cores, kind


def _make_kernel(n, tile_rows, tiles_per_core, needs_mask):
    """Kernel for one (tile_rows, C) row tile.

    row_loss = sum(t) * logsumexp(p) - sum(t * p)
    The per-tile scalar partial is accumulated directly into the (8, 128)
    lane-dense output block, which stays VMEM-resident across the reduction
    axis (same output block index for every step of axis 1).
    """

    def kernel(pred_ref, tgt_ref, out_ref):
        core = pl.program_id(0)
        i = pl.program_id(1)

        @pl.when(i == 0)
        def _init():
            out_ref[...] = jnp.zeros_like(out_ref)

        p = pred_ref[...].astype(jnp.float32)                 # (R, C)
        t = tgt_ref[...].astype(jnp.float32)                  # (R, C)

        if needs_mask:
            # Zero rows beyond the true N (ragged tail / duplicated clamped
            # tile). Masking happens before any arithmetic so garbage in the
            # out-of-bounds region can never produce NaN/Inf.
            tile_idx = core * tiles_per_core + i
            row0 = tile_idx * tile_rows
            rows = jax.lax.broadcasted_iota(jnp.int32, (tile_rows, 1), 0) + row0
            valid = rows < n                                  # (R, 1)
            p = jnp.where(valid, p, 0.0)
            t = jnp.where(valid, t, 0.0)

        # Numerically stable log-sum-exp along the class (lane) axis.
        m = jnp.max(p, axis=-1, keepdims=True)                # (R, 1)
        sum_e = jnp.sum(jnp.exp(p - m), axis=-1, keepdims=True)
        lse = m + jnp.log(sum_e)                              # (R, 1)

        sum_t = jnp.sum(t, axis=-1, keepdims=True)            # (R, 1)
        sum_tp = jnp.sum(t * p, axis=-1, keepdims=True)       # (R, 1)

        step_sum = jnp.sum(sum_t * lse - sum_tp)              # scalar tile partial
        out_ref[...] += jnp.full(out_ref.shape, step_sum, dtype=jnp.float32)

    return kernel


def cross_entropy_prob(pred, soft_targets):
    """pred, soft_targets: [N, C] arrays. Returns scalar f32 loss."""
    n, c = pred.shape
    assert soft_targets.shape == (n, c)

    itemsize = jnp.dtype(pred.dtype).itemsize
    sub = 8 if itemsize >= 4 else max(8, 32 // itemsize)      # sublane multiple

    vmem_bytes, num_cores, kind = _tpu_params()

    # Generation-aware block / VMEM-limit sizing.
    if vmem_bytes <= (64 << 20):          # v7x: 64 MiB VMEM per TC, 3.2 TB/s HBM
        target_block_bytes = 3 << 20
        vmem_limit = 44 << 20
    elif "v6" in kind:                    # v6e: 128 MiB VMEM, ~1.4 TB/s HBM
        target_block_bytes = 8 << 20
        vmem_limit = 96 << 20
    else:                                 # v5e & other 128 MiB-VMEM chips
        target_block_bytes = 4 << 20
        vmem_limit = 64 << 20
    vmem_limit = int(min(vmem_limit, vmem_bytes * 3 // 4))

    # Rows per tile from the HBM-block target (in the input dtype)...
    tile_rows = max(sub, (target_block_bytes // (c * itemsize)) // sub * sub)
    # ...capped by the in-kernel working set: 2 inputs x 2 pipeline buffers
    # (input dtype) + f32 upcast / elementwise temporaries (~5 f32 copies).
    ws_bytes_per_row = c * (4 * itemsize + 20)
    ws_cap = max(sub, ((vmem_limit * 7 // 10) // ws_bytes_per_row) // sub * sub)
    tile_rows = min(tile_rows, ws_cap)
    # ...and never bigger than one core's share of the batch.
    tile_rows = min(tile_rows, _round_up(_cdiv(n, num_cores), sub))

    num_tiles = _cdiv(n, tile_rows)
    tiles_per_core = _cdiv(num_tiles, num_cores)
    grid = (num_cores, tiles_per_core)
    needs_mask = (num_cores * tiles_per_core * tile_rows != n)

    # Clamp the block index so the DMA never starts fully past the array end;
    # the in-kernel mask (driven by the *logical* tile index) zeroes any
    # duplicated / out-of-range rows.
    last_tile = num_tiles - 1

    def in_map(core, i):
        return (jnp.minimum(core * tiles_per_core + i, last_tile), 0)

    kernel = _make_kernel(n, tile_rows, tiles_per_core, needs_mask)

    out = pl.pallas_call(
        kernel,
        out_shape=jax.ShapeDtypeStruct((num_cores * 8, 128), jnp.float32),
        grid_spec=pltpu.PrefetchScalarGridSpec(
            num_scalar_prefetch=0,
            grid=grid,
            in_specs=[
                pl.BlockSpec((tile_rows, c), in_map),
                pl.BlockSpec((tile_rows, c), in_map),
            ],
            out_specs=pl.BlockSpec((8, 128), lambda core, i: (core, 0)),
        ),
        compiler_params=pltpu.CompilerParams(
            dimension_semantics=("parallel", "arbitrary"),
            vmem_limit_bytes=vmem_limit,
        ),
    )(pred, soft_targets)

    # One partial per core block (each block is uniformly filled); combine and
    # take the mean over the TRUE N.
    partials = out[::8, 0]
    return jnp.sum(partials) / jnp.float32(n)


def _reference(pred, soft_targets):
    logp = jax.nn.log_softmax(pred.astype(jnp.float32), axis=1)
    return jnp.mean(jnp.sum(-soft_targets.astype(jnp.float32) * logp, axis=1))


if __name__ == "__main__":
    key = jax.random.PRNGKey(0)
    k1, k2, k3, k4, k5, k6 = jax.random.split(key, 6)

    # Case 1: small, sublane-aligned batch.
    N, C = 16, 128
    pred = jax.random.normal(k1, (N, C), dtype=jnp.float32)
    tgt = jax.nn.softmax(jax.random.normal(k2, (N, C), dtype=jnp.float32), axis=1)
    loss = cross_entropy_prob(pred, tgt)
    jax.block_until_ready(loss)
    ref = _reference(pred, tgt)
    assert jnp.allclose(loss, ref, rtol=1e-5, atol=1e-5), (loss, ref)

    # Case 2: ragged N (exercises the in-kernel row mask — no jnp.pad anywhere).
    N2, C2 = 20, 256
    pred2 = jax.random.normal(k3, (N2, C2), dtype=jnp.float32)
    tgt2 = jax.nn.softmax(jax.random.normal(k4, (N2, C2), dtype=jnp.float32), axis=1)
    loss2 = cross_entropy_prob(pred2, tgt2)
    jax.block_until_ready(loss2)
    ref2 = _reference(pred2, tgt2)
    assert jnp.allclose(loss2, ref2, rtol=1e-5, atol=1e-5), (loss2, ref2)

    # Case 3: bf16 inputs (exercises the in-kernel f32 upcast + 16-row sublanes).
    N3, C3 = 24, 384
    pred3 = jax.random.normal(k5, (N3, C3), dtype=jnp.float32).astype(jnp.bfloat16)
    tgt3 = jax.nn.softmax(
        jax.random.normal(k6, (N3, C3), dtype=jnp.float32), axis=1
    ).astype(jnp.bfloat16)
    loss3 = cross_entropy_prob(pred3, tgt3)
    jax.block_until_ready(loss3)
    ref3 = _reference(pred3, tgt3)
    assert jnp.allclose(loss3, ref3, rtol=5e-4, atol=5e-4), (loss3, ref3)

    print("KERNEL_OK")
</pallas_src>

<mosaic_0001>
module attributes {stable_mosaic.version = 11 : i64} {
  func.func @kernel(%arg0: i32, %arg1: i32, %arg2: memref<16x128xf32, #tpu.memory_space<vmem>>, %arg3: memref<16x128xf32, #tpu.memory_space<vmem>>, %arg4: memref<8x128xf32, #tpu.memory_space<vmem>>) attributes {dimension_semantics = [#tpu.dimension_semantics<parallel>, #tpu.dimension_semantics<arbitrary>], iteration_bounds = array<i64: 1, 1>, scalar_prefetch = 0 : i64, scratch_operands = 0 : i64, tpu.core_type = #tpu.core_type<tc>, window_params = [{transform_indices = @transform_0, window_bounds = array<i64: 16, 128>}, {transform_indices = @transform_1, window_bounds = array<i64: 16, 128>}, {transform_indices = @transform_2, window_bounds = array<i64: 8, 128>}]} {
    %c0_i32 = arith.constant 0 : i32
    %0 = arith.cmpi eq, %arg1, %c0_i32 : i32
    %1 = arith.extui %0 : i1 to i32
    %c0_i32_0 = arith.constant 0 : i32
    %2 = arith.cmpi ne, %1, %c0_i32_0 : i32
    scf.if %2 {
      %cst_12 = arith.constant 0.000000e+00 : f32
      %29 = vector.broadcast %cst_12 : f32 to vector<8x128xf32>
      %c0_13 = arith.constant 0 : index
      %c0_14 = arith.constant 0 : index
      %30 = vector.load %arg4[%c0_13, %c0_14] : memref<8x128xf32, #tpu.memory_space<vmem>>, vector<8x128xf32>
      tpu.vector_store %arg4[%c0_13, %c0_14], %29 {strides = array<i32>} : memref<8x128xf32, #tpu.memory_space<vmem>>, vector<8x128xf32>,
    } else {
    }
    %c0 = arith.constant 0 : index
    %c0_1 = arith.constant 0 : index
    %3 = vector.load %arg2[%c0, %c0_1] : memref<16x128xf32, #tpu.memory_space<vmem>>, vector<16x128xf32>
    %c0_2 = arith.constant 0 : index
    %c0_3 = arith.constant 0 : index
    %4 = vector.load %arg3[%c0_2, %c0_3] : memref<16x128xf32, #tpu.memory_space<vmem>>, vector<16x128xf32>
    %cst = arith.constant dense<0xFF800000> : vector<16xf32>
    %5 = vector.multi_reduction <maximumf>, %3, %cst [1] : vector<16x128xf32> to vector<16xf32>
    %6 = vector.shape_cast %5 : vector<16xf32> to vector<16x1xf32>
    %7 = vector.broadcast %6 : vector<16x1xf32> to vector<16x128xf32>
    %8 = arith.subf %3, %7 : vector<16x128xf32>
    %9 = math.exp %8 : vector<16x128xf32>
    %cst_4 = arith.constant dense<0.000000e+00> : vector<16xf32>
    %10 = vector.multi_reduction <add>, %9, %cst_4 [1] : vector<16x128xf32> to vector<16xf32>
    %11 = vector.shape_cast %10 : vector<16xf32> to vector<16x1xf32>
    %12 = math.log %11 : vector<16x1xf32>
    %13 = arith.addf %6, %12 : vector<16x1xf32>
    %cst_5 = arith.constant dense<0.000000e+00> : vector<16xf32>
    %14 = vector.multi_reduction <add>, %4, %cst_5 [1] : vector<16x128xf32> to vector<16xf32>
    %15 = vector.shape_cast %14 : vector<16xf32> to vector<16x1xf32>
    %16 = arith.mulf %4, %3 : vector<16x128xf32>
    %cst_6 = arith.constant dense<0.000000e+00> : vector<16xf32>
    %17 = vector.multi_reduction <add>, %16, %cst_6 [1] : vector<16x128xf32> to vector<16xf32>
    %18 = vector.shape_cast %17 : vector<16xf32> to vector<16x1xf32>
    %19 = arith.mulf %15, %13 : vector<16x1xf32>
    %20 = arith.subf %19, %18 : vector<16x1xf32>
    %21 = vector.shape_cast %20 : vector<16x1xf32> to vector<1x16x1xf32>
    %cst_7 = arith.constant dense<0.000000e+00> : vector<1xf32>
    %22 = vector.multi_reduction <add>, %21, %cst_7 [1, 2] : vector<1x16x1xf32> to vector<1xf32>
    %23 = vector.shape_cast %22 : vector<1xf32> to vector<1x1x1xf32>
    %24 = vector.extract %23[0, 0, 0] : f32 from vector<1x1x1xf32>
    %c0_8 = arith.constant 0 : index
    %c0_9 = arith.constant 0 : index
    %25 = vector.load %arg4[%c0_8, %c0_9] : memref<8x128xf32, #tpu.memory_space<vmem>>, vector<8x128xf32>
    %26 = vector.broadcast %24 : f32 to vector<8x128xf32>
    %27 = arith.addf %25, %26 : vector<8x128xf32>
    %c0_10 = arith.constant 0 : index
    %c0_11 = arith.constant 0 : index
    %28 = vector.load %arg4[%c0_10, %c0_11] : memref<8x128xf32, #tpu.memory_space<vmem>>, vector<8x128xf32>
    tpu.vector_store %arg4[%c0_10, %c0_11], %27 {strides = array<i32>} : memref<8x128xf32, #tpu.memory_space<vmem>>, vector<8x128xf32>,
    return
  }
  func.func @transform_0(%arg0: i32, %arg1: i32) -> (i32, i32) {
    %c1_i32 = arith.constant 1 : i32
    %0 = arith.muli %arg0, %c1_i32 : i32
    %1 = arith.addi %0, %arg1 : i32
    %c0_i32 = arith.constant 0 : i32
    %2 = arith.minsi %1, %c0_i32 : i32
    %c0_i32_0 = arith.constant 0 : i32
    %c0_i32_1 = arith.constant 0 : i32
    return %2, %c0_i32_0 : i32, i32
  }
  func.func @transform_1(%arg0: i32, %arg1: i32) -> (i32, i32) {
    %c1_i32 = arith.constant 1 : i32
    %0 = arith.muli %arg0, %c1_i32 : i32
    %1 = arith.addi %0, %arg1 : i32
    %c0_i32 = arith.constant 0 : i32
    %2 = arith.minsi %1, %c0_i32 : i32
    %c0_i32_0 = arith.constant 0 : i32
    %c0_i32_1 = arith.constant 0 : i32
    return %2, %c0_i32_0 : i32, i32
  }
  func.func @transform_2(%arg0: i32, %arg1: i32) -> (i32, i32) {
    %c0_i32 = arith.constant 0 : i32
    %c0_i32_0 = arith.constant 0 : i32
    return %arg0, %c0_i32 : i32, i32
  }
}

</mosaic_0001>

<bundles_post_ra>
// kernel: tpu_custom_call.1
= control target key start
LH: loop header
LB: loop body
LE: loop exit
PB: predicated region body
PF: predicated region fallthrough
CT: control target
= control target key end

     0   :  { %7 = vsyncpa [#allocation3], 0  ;;  %s251_s0 = inlined_call_operand.hbm [shape: f32[16,128], index: 0, kind: input, shape index: {}]   ;;  %s252_s1 = inlined_call_operand.hbm [shape: f32[16,128], index: 1, kind: input, shape index: {}]   ;;  %s253_s2 = inlined_call_operand.hbm [shape: f32[8,128], index: 2, kind: output, shape index: {}]  }
   0x1   :  { %8 = vsyncpa [#allocation6], 0 }
   0x2   :  { %9 = vsyncpa [#allocation4], 0  ;;  %s222_s9 = smov [#allocation2]  }
   0x3   :  { %s21_s10 = sshll.u32 %s222_s9, 4  ;;  %s22_s10 = int_to_ptr.vmem [resolvable:$true] %s21_s10 }
   0x4   :  { %s164_s11 = scalar_lea.vmem %s22_s10, 256  ;;  %p169_p1 = scmp.lt.s32.totalorder %s22_s10, %s22_s10 }
   0x5   :  { %p165_p0 = scmp.ne.s32.totalorder %s22_s10, %s164_s11  ;;  %p170_p2 = scmp.lt.s32.totalorder %s164_s11, %s164_s11 }
   0x7   :  { %p171_p3 = por %p170_p2, %p169_p1 }
   0x9   :  { %p172_p4 = pnand %p171_p3, %p165_p0 }
   0xb   :  { %175 = shalt.err (!%p172_p4)
}
   0xc   :  { %s223_s12 = smov 128   ;;  %s224_s13 = smov 8  }
   0xd   :  { %27 = dma.hbm_to_vmem [thread:$0]  %s251_s0, 256, %s22_s10, [#allocation3], %s223_s12, %s223_s12, %s224_s13  }
   0xe   :  { %s225_s16 = smov [#allocation5]  }
   0xf   :  { %s39_s17 = sshll.u32 %s225_s16, 4  ;;  %s40_s17 = int_to_ptr.vmem [resolvable:$true] %s39_s17 }
  0x10   :  { %s184_s18 = scalar_lea.vmem %s40_s17, 256  ;;  %p189_p6 = scmp.lt.s32.totalorder %s40_s17, %s40_s17 }
  0x11   :  { %p185_p5 = scmp.ne.s32.totalorder %s40_s17, %s184_s18  ;;  %p190_p7 = scmp.lt.s32.totalorder %s184_s18, %s184_s18 }
  0x13   :  { %p191_p8 = por %p190_p7, %p189_p6 }
  0x15   :  { %p192_p9 = pnand %p191_p8, %p185_p5 }
  0x17   :  { %195 = shalt.err (!%p192_p9)
}
  0x18   :  { %45 = dma.hbm_to_vmem [thread:$0]  %s252_s1, 256, %s40_s17, [#allocation6], %s223_s12, %s223_s12, %s224_s13  }
  0x19   :  { %216 = dma.done.wait [#allocation3], 256  }
  0x1a   :  { %217 = vsyncadd [#allocation3], 4294967040 }
  0x1b   :  { %218 = dma.done.wait [#allocation6], 256  }
  0x1c   :  { %219 = vsyncadd [#allocation6], 4294967040  ;;  %v65_v0 = vld [vmem:[#allocation2] sm:$0xff]  ;;  %v66_v1 = vld [vmem:[#allocation2 + $0x8] sm:$0xff]  ;;  %vm103_vm0 = vcmask 7168   ;;  %s226_s0 = smov [#allocation7]  }
  0x1d   :  { %69 = vmax.xlane.f32.xlu0 %v65_v0  ;;  %v67_v2 = vld [vmem:[#allocation5] sm:$0xff]  ;;  %v68_v12 = vld [vmem:[#allocation5 + $0x8] sm:$0xff]  ;;  %s126_s1 = sshll.u32 %s226_s0, 4  ;;  %s127_s1 = int_to_ptr.vmem [resolvable:$true] %s126_s1 }
  0x1e   :  { %v93_v3 = vmul.f32 %v67_v2, %v65_v0  ;;  %v94_v13 = vmul.f32 %v68_v12, %v66_v1  ;;  %s196_s22 = scalar_lea.vmem %s127_s1, 128  ;;  %p201_p11 = scmp.lt.s32.totalorder %s127_s1, %s127_s1 }
  0x1f   :  { %p197_p10 = scmp.ne.s32.totalorder %s127_s1, %s196_s22  ;;  %p202_p12 = scmp.lt.s32.totalorder %s196_s22, %s196_s22 }
  0x21   :  { %71 = vmax.xlane.f32.xlu0 %v66_v1  ;;  %p203_p13 = por %p202_p12, %p201_p11 }
  0x23   :  { %p204_p0 = pnand %p203_p13, %p197_p10 }
  0x25   :  { %89 = vadd.xlane.f32.xlu0 %v67_v2 }
  0x29   :  { %95 = vadd.xlane.f32.xlu0 %v93_v3 }
  0xa6   :  { %v70_v4 = vpop.xlane.xlu0 %69 }
  0xa7   :  { %v73_v5 = vsub.f32 %v65_v0, %v70_v4 }
  0xa9   :  { %v75_v6 = vmul.f32 1.442695, %v73_v5 }
  0xaa   :  { %v72_v7 = vpop.xlane.xlu0 %71 }
  0xab   :  { %148 = vpow2.f32 %v75_v6  ;;  %v74_v8 = vsub.f32 %v66_v1, %v72_v7 }
  0xad   :  { %v77_v9 = vmul.f32 1.442695, %v74_v8 }
  0xae   :  { %v90_v17 = vpop.xlane.xlu0 %89 }
  0xaf   :  { %150 = vpow2.f32 %v77_v9 }
  0xb2   :  { %v96_v24 = vpop.xlane.xlu0 %95 }
  0xb8   :  { %v149_v10 = vpop.eup %148 }
  0xb9   :  { %79 = vadd.xlane.f32.xlu1 %v149_v10 }
  0xbc   :  { %v151_v11 = vpop.eup %150 }
  0xbd   :  { %81 = vadd.xlane.f32.xlu1 %v151_v11 }
  0xc1   :  { %91 = vadd.xlane.f32.xlu1 %v68_v12 }
  0xc5   :  { %97 = vadd.xlane.f32.xlu1 %v94_v13 }
 0x142   :  { %v80_v14 = vpop.xlane.xlu1 %79 }
 0x143   :  { %152 = vlog2.f32 %v80_v14 }
 0x146   :  { %v82_v15 = vpop.xlane.xlu1 %81 }
 0x147   :  { %154 = vlog2.f32 %v82_v15 }
 0x14a   :  { %v92_v19 = vpop.xlane.xlu1 %91 }
 0x14e   :  { %v98_v26 = vpop.xlane.xlu1 %97 }
 0x150   :  { %v153_v16 = vpop.eup %152 }
 0x151   :  { %v84_v18 = vmul.f32 0.6931472, %v153_v16 }
 0x153   :  { %v87_v20 = vadd.f32 %v84_v18, %v70_v4 }
 0x154   :  { %v155_v21 = vpop.eup %154 }
 0x155   :  { %v86_v22 = vmul.f32 0.6931472, %v155_v21  ;;  %v99_v23 = vmul.f32 %v90_v17, %v87_v20 }
 0x157   :  { %v88_v25 = vadd.f32 %v86_v22, %v72_v7  ;;  %v101_v28 = vsub.f32 %v99_v23, %v96_v24 }
 0x159   :  { %v100_v27 = vmul.f32 %v92_v19, %v88_v25  ;;  %v104_v30 = vsel %vm103_vm0, %v101_v28, 0.0 }
 0x15b   :  { %v102_v29 = vsub.f32 %v100_v27, %v98_v26 }
 0x15d   :  { %v105_v31 = vsel %vm103_vm0, %v102_v29, 0.0 }
 0x15e   :  { %v106_v32 = vadd.f32 %v105_v31, %v104_v30 }
 0x160   :  { %107 = vadd.xlane.f32.xlu0 %v106_v32 }
 0x1e9   :  { %v108_v33 = vpop.xlane.xlu0 %107 }
 0x1ea   :  { %v109_v34 = vrot.slane %v108_v33, 4 }
 0x1ec   :  { %v110_v35 = vadd.f32 %v109_v34, %v108_v33 }
 0x1ee   :  { %v111_v36 = vrot.slane %v110_v35, 2 }
 0x1f0   :  { %v112_v37 = vadd.f32 %v111_v36, %v110_v35 }
 0x1f2   :  { %v113_v38 = vrot.slane %v112_v37, 1 }
 0x1f4   :  { %v114_v39 = vadd.f32 %v113_v38, %v112_v37 }
 0x1f6   :  { %140 = vpush %v114_v39 }
 0x227   :  { %s141_s21 = spop %140 }
 0x228   :  { %v117_v40 = vstv %s141_s21 }
 0x229   :  { %119 = vst [vmem:[#allocation7] sm:$0xff] %v117_v40 }
 0x22a   :  { %207 = shalt.err (!%p204_p0)
}
 0x22b   :  { %129 = dma.vmem_to_hbm [thread:$0]  %s127_s1, 128, %s253_s2, [#allocation4]  }
 0x22c   :  { %220 = dma.done.wait [#allocation4], 128  }
 0x22d   :  { %221 = vsyncadd [#allocation4], 4294967168 }
 0x22e   :  { %133 = vsyncpa [#allocation3], 1 }
 0x22f   :  { %134 = vsyncpa [#allocation6], 1 }
 0x230   :  { %135 = vsyncpa [#allocation4], 1 }

</bundles_post_ra>
